<compile_context>
chip_gen: v7x
topology: tpu7x:2x2x1
jax: 0.10.0
libtpu: 0.0.40
codegen_flags: <defaults>
</compile_context>

<pallas_src>
import functools

import jax
import jax.numpy as jnp
from jax.experimental import pallas as pl
from jax.experimental.pallas import tpu as pltpu


def _round_up(n, m):
    return ((n + m - 1) // m) * m


def qnet_kernel(x_ref, w1_ref, b1_ref, w2_ref, b2_ref, w3_ref, b3_ref, o_ref):
    # One batch tile per grid step; everything stays in VMEM/vregs.
    x = x_ref[...].astype(jnp.bfloat16)                                # (TB, K)
    h1 = jnp.dot(x, w1_ref[...], preferred_element_type=jnp.float32) + b1_ref[...]
    h1 = jnp.maximum(h1, 0.0).astype(jnp.bfloat16)                     # (TB, H)
    h2 = jnp.dot(h1, w2_ref[...], preferred_element_type=jnp.float32) + b2_ref[...]
    h2 = jnp.maximum(h2, 0.0).astype(jnp.bfloat16)                     # (TB, H)
    q = jnp.dot(h2, w3_ref[...], preferred_element_type=jnp.float32) + b3_ref[...]
    o_ref[...] = q.astype(o_ref.dtype)                                 # (TB, A) only real cols


def _choose_tile_b(B, tile_b):
    """Batch tile: big (amortize per-step overhead), multiple of 16 when tiled,
    >= 2 tiles for moderate/large batches (v7x megacore), never larger than B
    (a full-extent block is always legal, so tiny batches need no padding)."""
    tile_b = max(16, (tile_b // 16) * 16)
    if B <= tile_b:
        if B >= 512:
            # Split so both v7x TensorCores get a tile.
            return _round_up(pl.cdiv(B, 2), 16)
        return B                      # single full-extent block, no padding/masking
    return tile_b


def prepare_params(params):
    """One-time parameter prep (hoisted out of the per-call path):
    weights -> bf16, biases -> f32 with shape (1, out)."""
    def w(a):
        return jnp.asarray(a, jnp.bfloat16)

    def b(a):
        return jnp.asarray(a, jnp.float32).reshape(1, -1)

    return {
        "w1": w(params["w1"]), "b1": b(params["b1"]),
        "w2": w(params["w2"]), "b2": b(params["b2"]),
        "w3": w(params["w3"]), "b3": b(params["b3"]),
    }


@functools.partial(jax.jit, static_argnames=("tile_b",))
def qnetwork_forward(x, prepared, tile_b=1024):
    """QNetwork forward: ReLU(x@W1+b1) -> ReLU(.@W2+b2) -> .@W3+b3.

    x: [B, input_dim] float32 (unpadded, cast to bf16 inside the kernel).
    prepared: output of prepare_params() — bf16 weights [in,out], f32 biases [1,out].
    Returns [B, action_dim] float32.
    """
    w1, b1 = prepared["w1"], prepared["b1"]
    w2, b2 = prepared["w2"], prepared["b2"]
    w3, b3 = prepared["w3"], prepared["b3"]

    B, in_dim = x.shape
    H = w1.shape[1]
    A = w3.shape[1]

    tb = _choose_tile_b(B, tile_b)
    grid = (pl.cdiv(B, tb),)          # partial last tile handled by masked DMA

    out = pl.pallas_call(
        qnet_kernel,
        out_shape=jax.ShapeDtypeStruct((B, A), jnp.float32),
        grid_spec=pltpu.PrefetchScalarGridSpec(
            num_scalar_prefetch=0,
            grid=grid,
            in_specs=[
                pl.BlockSpec((tb, in_dim), lambda i: (i, 0)),   # x: tiled on batch, unpadded
                pl.BlockSpec((in_dim, H), lambda i: (0, 0)),    # w1: VMEM-resident
                pl.BlockSpec((1, H), lambda i: (0, 0)),         # b1
                pl.BlockSpec((H, H), lambda i: (0, 0)),         # w2
                pl.BlockSpec((1, H), lambda i: (0, 0)),         # b2
                pl.BlockSpec((H, A), lambda i: (0, 0)),         # w3 (real A columns only)
                pl.BlockSpec((1, A), lambda i: (0, 0)),         # b3
            ],
            out_specs=pl.BlockSpec((tb, A), lambda i: (i, 0)),  # only real Q columns stored
        ),
        compiler_params=pltpu.CompilerParams(
            dimension_semantics=("parallel",),   # shard batch tiles across v7x's 2 TCs
        ),
    )(x, w1, b1, w2, b2, w3, b3)

    return out


def init_params(key, input_dim, action_dim, hidden_dim=128):
    """Deterministic synthetic init (PyTorch-Linear-like uniform fan-in scaling)."""
    ks = jax.random.split(key, 6)

    def linear(kw, kb, fan_in, fan_out):
        bound = 1.0 / jnp.sqrt(jnp.float32(fan_in))
        w = jax.random.uniform(kw, (fan_in, fan_out), jnp.float32, -bound, bound)
        b = jax.random.uniform(kb, (1, fan_out), jnp.float32, -bound, bound)
        return w, b

    w1, b1 = linear(ks[0], ks[1], input_dim, hidden_dim)
    w2, b2 = linear(ks[2], ks[3], hidden_dim, hidden_dim)
    w3, b3 = linear(ks[4], ks[5], hidden_dim, action_dim)
    return {"w1": w1, "b1": b1, "w2": w2, "b2": b2, "w3": w3, "b3": b3}


def qnetwork_ref_f32(x, p):
    h1 = jnp.maximum(x @ p["w1"] + p["b1"], 0.0)
    h2 = jnp.maximum(h1 @ p["w2"] + p["b2"], 0.0)
    return h2 @ p["w3"] + p["b3"]


def qnetwork_ref_bf16(x, p):
    # Mirrors the kernel's numerics: bf16 operands, f32 accumulation/bias/ReLU.
    xb = x.astype(jnp.bfloat16)
    w1 = p["w1"].astype(jnp.bfloat16)
    w2 = p["w2"].astype(jnp.bfloat16)
    w3 = p["w3"].astype(jnp.bfloat16)
    h1 = jnp.maximum(
        jnp.dot(xb, w1, preferred_element_type=jnp.float32) + p["b1"], 0.0
    ).astype(jnp.bfloat16)
    h2 = jnp.maximum(
        jnp.dot(h1, w2, preferred_element_type=jnp.float32) + p["b2"], 0.0
    ).astype(jnp.bfloat16)
    return jnp.dot(h2, w3, preferred_element_type=jnp.float32) + p["b3"]


if __name__ == "__main__":
    key = jax.random.PRNGKey(0)
    k_x, k_p = jax.random.split(key)

    batch = 8
    input_dim = 64
    action_dim = 32
    hidden_dim = 128

    x = jax.random.normal(k_x, (batch, input_dim), jnp.float32)
    params = init_params(k_p, input_dim, action_dim, hidden_dim)
    prepared = prepare_params(params)   # one-time weight cast, outside the hot path

    q = qnetwork_forward(x, prepared)
    q = jax.block_until_ready(q)
    assert q.shape == (batch, action_dim)

    # Tight check vs a reference with matching bf16-operand / f32-accum numerics.
    q_bf16 = qnetwork_ref_bf16(x, params)
    assert jnp.allclose(q, q_bf16, atol=1e-2, rtol=1e-2)

    # Loose check vs the pure-f32 PyTorch-equivalent reference (bf16 cast ~1e-2 error).
    q_f32 = qnetwork_ref_f32(x, params)
    assert float(jnp.max(jnp.abs(q - q_f32))) < 0.1

    print("KERNEL_OK")
</pallas_src>

<mosaic_0001>
module attributes {stable_mosaic.version = 11 : i64} {
  func.func @qnet_kernel(%arg0: i32, %arg1: memref<8x64xf32, #tpu.memory_space<vmem>>, %arg2: memref<64x128xbf16, #tpu.memory_space<vmem>>, %arg3: memref<1x128xf32, #tpu.memory_space<vmem>>, %arg4: memref<128x128xbf16, #tpu.memory_space<vmem>>, %arg5: memref<1x128xf32, #tpu.memory_space<vmem>>, %arg6: memref<128x32xbf16, #tpu.memory_space<vmem>>, %arg7: memref<1x32xf32, #tpu.memory_space<vmem>>, %arg8: memref<8x32xf32, #tpu.memory_space<vmem>>) attributes {dimension_semantics = [#tpu.dimension_semantics<parallel>], iteration_bounds = array<i64: 1>, scalar_prefetch = 0 : i64, scratch_operands = 0 : i64, tpu.core_type = #tpu.core_type<tc>, window_params = [{transform_indices = @transform_0, window_bounds = array<i64: 8, 64>}, {pipeline_mode = #tpu.pipeline_mode<synchronous>, transform_indices = @transform_1, window_bounds = array<i64: 64, 128>}, {pipeline_mode = #tpu.pipeline_mode<synchronous>, transform_indices = @transform_2, window_bounds = array<i64: 1, 128>}, {pipeline_mode = #tpu.pipeline_mode<synchronous>, transform_indices = @transform_3, window_bounds = array<i64: 128, 128>}, {pipeline_mode = #tpu.pipeline_mode<synchronous>, transform_indices = @transform_4, window_bounds = array<i64: 1, 128>}, {pipeline_mode = #tpu.pipeline_mode<synchronous>, transform_indices = @transform_5, window_bounds = array<i64: 128, 32>}, {pipeline_mode = #tpu.pipeline_mode<synchronous>, transform_indices = @transform_6, window_bounds = array<i64: 1, 32>}, {transform_indices = @transform_7, window_bounds = array<i64: 8, 32>}]} {
    %c0 = arith.constant 0 : index
    %c0_0 = arith.constant 0 : index
    %0 = vector.load %arg1[%c0, %c0_0] : memref<8x64xf32, #tpu.memory_space<vmem>>, vector<8x64xf32>
    %1 = arith.truncf %0 : vector<8x64xf32> to vector<8x64xbf16>
    %c0_1 = arith.constant 0 : index
    %c0_2 = arith.constant 0 : index
    %2 = vector.load %arg2[%c0_1, %c0_2] : memref<64x128xbf16, #tpu.memory_space<vmem>>, vector<64x128xbf16>
    %cst = arith.constant dense<0.000000e+00> : vector<8x128xf32>
    %3 = tpu.matmul %1, %2, %cst {dimension_numbers = #tpu.dot_dimension_numbers<[1], [0], [0], [1], [0, 0, 1, 1], [], []>} : vector<8x64xbf16>, vector<64x128xbf16>, vector<8x128xf32> -> vector<8x128xf32>
    %c0_3 = arith.constant 0 : index
    %c0_4 = arith.constant 0 : index
    %4 = vector.load %arg3[%c0_3, %c0_4] : memref<1x128xf32, #tpu.memory_space<vmem>>, vector<1x128xf32>
    %5 = vector.broadcast %4 : vector<1x128xf32> to vector<8x128xf32>
    %6 = arith.addf %3, %5 : vector<8x128xf32>
    %cst_5 = arith.constant 0.000000e+00 : f32
    %7 = vector.broadcast %cst_5 : f32 to vector<8x128xf32>
    %8 = arith.maximumf %6, %7 : vector<8x128xf32>
    %9 = arith.truncf %8 : vector<8x128xf32> to vector<8x128xbf16>
    %c0_6 = arith.constant 0 : index
    %c0_7 = arith.constant 0 : index
    %10 = vector.load %arg4[%c0_6, %c0_7] : memref<128x128xbf16, #tpu.memory_space<vmem>>, vector<128x128xbf16>
    %cst_8 = arith.constant dense<0.000000e+00> : vector<8x128xf32>
    %11 = tpu.matmul %9, %10, %cst_8 {dimension_numbers = #tpu.dot_dimension_numbers<[1], [0], [0], [1], [0, 0, 1, 1], [], []>} : vector<8x128xbf16>, vector<128x128xbf16>, vector<8x128xf32> -> vector<8x128xf32>
    %c0_9 = arith.constant 0 : index
    %c0_10 = arith.constant 0 : index
    %12 = vector.load %arg5[%c0_9, %c0_10] : memref<1x128xf32, #tpu.memory_space<vmem>>, vector<1x128xf32>
    %13 = vector.broadcast %12 : vector<1x128xf32> to vector<8x128xf32>
    %14 = arith.addf %11, %13 : vector<8x128xf32>
    %cst_11 = arith.constant 0.000000e+00 : f32
    %15 = vector.broadcast %cst_11 : f32 to vector<8x128xf32>
    %16 = arith.maximumf %14, %15 : vector<8x128xf32>
    %17 = arith.truncf %16 : vector<8x128xf32> to vector<8x128xbf16>
    %c0_12 = arith.constant 0 : index
    %c0_13 = arith.constant 0 : index
    %18 = vector.load %arg6[%c0_12, %c0_13] : memref<128x32xbf16, #tpu.memory_space<vmem>>, vector<128x32xbf16>
    %cst_14 = arith.constant dense<0.000000e+00> : vector<8x32xf32>
    %19 = tpu.matmul %17, %18, %cst_14 {dimension_numbers = #tpu.dot_dimension_numbers<[1], [0], [0], [1], [0, 0, 1, 1], [], []>} : vector<8x128xbf16>, vector<128x32xbf16>, vector<8x32xf32> -> vector<8x32xf32>
    %c0_15 = arith.constant 0 : index
    %c0_16 = arith.constant 0 : index
    %20 = vector.load %arg7[%c0_15, %c0_16] : memref<1x32xf32, #tpu.memory_space<vmem>>, vector<1x32xf32>
    %21 = vector.broadcast %20 : vector<1x32xf32> to vector<8x32xf32>
    %22 = arith.addf %19, %21 : vector<8x32xf32>
    %c0_17 = arith.constant 0 : index
    %c0_18 = arith.constant 0 : index
    %23 = vector.load %arg8[%c0_17, %c0_18] : memref<8x32xf32, #tpu.memory_space<vmem>>, vector<8x32xf32>
    tpu.vector_store %arg8[%c0_17, %c0_18], %22 {strides = array<i32>} : memref<8x32xf32, #tpu.memory_space<vmem>>, vector<8x32xf32>,
    return
  }
  func.func @transform_0(%arg0: i32) -> (i32, i32) {
    %c0_i32 = arith.constant 0 : i32
    %c0_i32_0 = arith.constant 0 : i32
    return %arg0, %c0_i32 : i32, i32
  }
  func.func @transform_1(%arg0: i32) -> (i32, i32) {
    %c0_i32 = arith.constant 0 : i32
    %c0_i32_0 = arith.constant 0 : i32
    %c0_i32_1 = arith.constant 0 : i32
    return %c0_i32, %c0_i32_0 : i32, i32
  }
  func.func @transform_2(%arg0: i32) -> (i32, i32) {
    %c0_i32 = arith.constant 0 : i32
    %c0_i32_0 = arith.constant 0 : i32
    %c0_i32_1 = arith.constant 0 : i32
    return %c0_i32, %c0_i32_0 : i32, i32
  }
  func.func @transform_3(%arg0: i32) -> (i32, i32) {
    %c0_i32 = arith.constant 0 : i32
    %c0_i32_0 = arith.constant 0 : i32
    %c0_i32_1 = arith.constant 0 : i32
    return %c0_i32, %c0_i32_0 : i32, i32
  }
  func.func @transform_4(%arg0: i32) -> (i32, i32) {
    %c0_i32 = arith.constant 0 : i32
    %c0_i32_0 = arith.constant 0 : i32
    %c0_i32_1 = arith.constant 0 : i32
    return %c0_i32, %c0_i32_0 : i32, i32
  }
  func.func @transform_5(%arg0: i32) -> (i32, i32) {
    %c0_i32 = arith.constant 0 : i32
    %c0_i32_0 = arith.constant 0 : i32
    %c0_i32_1 = arith.constant 0 : i32
    return %c0_i32, %c0_i32_0 : i32, i32
  }
  func.func @transform_6(%arg0: i32) -> (i32, i32) {
    %c0_i32 = arith.constant 0 : i32
    %c0_i32_0 = arith.constant 0 : i32
    %c0_i32_1 = arith.constant 0 : i32
    return %c0_i32, %c0_i32_0 : i32, i32
  }
  func.func @transform_7(%arg0: i32) -> (i32, i32) {
    %c0_i32 = arith.constant 0 : i32
    %c0_i32_0 = arith.constant 0 : i32
    return %arg0, %c0_i32 : i32, i32
  }
}

</mosaic_0001>

<bundles_post_ra>
// kernel: qnetwork_forward.1
= control target key start
LH: loop header
LB: loop body
LE: loop exit
PB: predicated region body
PF: predicated region fallthrough
CT: control target
= control target key end

     0   :  { %12 = vsyncpa [#allocation3], 0  ;;  %s750_s0 = inlined_call_operand.hbm [shape: f32[8,64], index: 0, kind: input, shape index: {}]   ;;  %s751_s1 = inlined_call_operand.vmem [shape: bf16[64,128], index: 1, kind: input, shape index: {}]   ;;  %s752_s2 = inlined_call_operand.vmem [shape: f32[1,128], index: 2, kind: input, shape index: {}]   ;;  %s753_s3 = inlined_call_operand.vmem [shape: bf16[128,128], index: 3, kind: input, shape index: {}]   ;;  %s754_s4 = inlined_call_operand.vmem [shape: f32[1,128], index: 4, kind: input, shape index: {}]   ;;  %s755_s5 = inlined_call_operand.vmem [shape: bf16[128,32], index: 5, kind: input, shape index: {}]   ;;  %s756_s6 = inlined_call_operand.hbm [shape: f32[1,32], index: 6, kind: input, shape index: {}]   ;;  %s757_s7 = inlined_call_operand.hbm [shape: f32[8,32], index: 7, kind: output, shape index: {}]  }
   0x1   :  { %13 = vsyncpa [#allocation6], 0 }
   0x2   :  { %14 = vsyncpa [#allocation4], 0  ;;  %s577_s24 = smov [#allocation2]   ;;  %s578_s26 = smov [#allocation5]  }
   0x3   :  { %s21_s25 = sshll.u32 %s577_s24, 4  ;;  %s41_s27 = sshll.u32 %s578_s26, 4  ;;  %s22_s25 = int_to_ptr.vmem [resolvable:$true] %s21_s25  ;;  %s42_s27 = int_to_ptr.vmem [resolvable:$true] %s41_s27 }
   0x4   :  { %s505_s30 = scalar_lea.hbm %s750_s0, 128 }
   0x5   :  { %p506_p0 = scmp.ne.s32.totalorder %s750_s0, %s505_s30  ;;  %p509_p1 = scmp.lt.u32.totalorder %s505_s30, %s750_s0 }
   0x7   :  { %p511_p2 = pnand %p509_p1, %p506_p0 }
   0x9   :  { %514 = shalt.err (!%p511_p2)
}
   0xa   :  { %s515_s12 = scalar_lea.vmem %s22_s25, 128  ;;  %p520_p4 = scmp.lt.s32.totalorder %s22_s25, %s22_s25 }
   0xb   :  { %p516_p3 = scmp.ne.s32.totalorder %s22_s25, %s515_s12  ;;  %p521_p5 = scmp.lt.s32.totalorder %s515_s12, %s515_s12 }
   0xd   :  { %p522_p6 = por %p521_p5, %p520_p4 }
   0xf   :  { %p523_p7 = pnand %p522_p6, %p516_p3 }
  0x11   :  { %526 = shalt.err (!%p523_p7)
}
  0x12   :  { %24 = dma.hbm_to_vmem [thread:$0]  %s750_s0, 128, %s22_s25, [#allocation3]  }
  0x13   :  { %s527_s17 = scalar_lea.hbm %s756_s6, 16 }
  0x14   :  { %p528_p8 = scmp.ne.s32.totalorder %s756_s6, %s527_s17  ;;  %p531_p9 = scmp.lt.u32.totalorder %s527_s17, %s756_s6 }
  0x16   :  { %p533_p10 = pnand %p531_p9, %p528_p8 }
  0x18   :  { %536 = shalt.err (!%p533_p10)
}
  0x19   :  { %s537_s22 = scalar_lea.vmem %s42_s27, 16  ;;  %s541_s23 = scalar_lea.vmem %s42_s27, 32 }
  0x1a   :  { %p538_p11 = scmp.ne.s32.totalorder %s42_s27, %s537_s22  ;;  %p542_p12 = scmp.lt.s32.totalorder %s42_s27, %s42_s27 }
  0x1b   :  { %p543_p13 = scmp.lt.s32.totalorder %s541_s23, %s537_s22 }
  0x1d   :  { %p544_p0 = por %p543_p13, %p542_p12 }
  0x1f   :  { %p545_p1 = pnand %p544_p0, %p538_p11 }
  0x21   :  { %548 = shalt.err (!%p545_p1)
}
  0x22   :  { %44 = dma.hbm_to_vmem [thread:$0]  %s756_s6, 16, %s42_s27, [#allocation6]  }
  0x23   :  { %571 = dma.done.wait [#allocation3], 128  }
  0x24   :  { %572 = vsyncadd [#allocation3], 4294967168 }
  0x25   :  { %573 = dma.done.wait [#allocation6], 16  }
  0x26   :  { %574 = vsyncadd [#allocation6], 4294967280  ;;  %v579_v0 = vmov 0.0   ;;  %vm580_vm0 = vmmov 0   ;;  %v485_v1 = vld [vmem:[%s751_s1] sm:$0xff]   ;;  %v486_v2 = vld [vmem:[%s751_s1 + $0x8] sm:$0xff]  }
  0x27   :  { %428 = vmatprep.subr.bf16.mxu0 %v579_v0  ;;  %436 = vmatprep.mubr.msk.bf16.mxu0 %vm580_vm0, %v579_v0  ;;  %v489_v3 = vld [vmem:[%s753_s3] sm:$0xff]   ;;  %v487_v4 = vld [vmem:[%s751_s1 + $0x10] sm:$0xff]   ;;  %v490_v5 = vld [vmem:[%s753_s3 + $0x8] sm:$0xff]   ;;  %vm93_vm1 = vcmask 523264   ;;  %vm363_vm2 = vcmask 261120  }
  0x28   :  { %440 = vmatprep.subr.bf16.mxu1 %v579_v0  ;;  %456 = vmatprep.mubr.msk.bf16.mxu1 %vm580_vm0, %v579_v0  ;;  %v488_v6 = vld [vmem:[%s751_s1 + $0x18] sm:$0xff]   ;;  %v52_v7 = vld [vmem:[#allocation2] sm:$0xff]  ;;  %v491_v8 = vld [vmem:[%s753_s3 + $0x10] sm:$0xff]   ;;  %s581_s1 = smov [#allocation7]  }
  0x29   :  { %429 = vmatpush3.bf16.msra.mxu0 %v485_v1  ;;  %441 = vmatpush3.bf16.msra.mxu1 %v489_v3  ;;  %v53_v9 = vpack.c.bf16 %v52_v7, %v52_v7  ;;  %v492_v10 = vld [vmem:[%s753_s3 + $0x18] sm:$0xff]   ;;  %v493_v11 = vld [vmem:[%s753_s3 + $0x20] sm:$0xff]   ;;  %v494_v12 = vld [vmem:[%s753_s3 + $0x28] sm:$0xff]   ;;  %s371_s17 = sshll.u32 %s581_s1, 4  ;;  %s372_s17 = int_to_ptr.vmem [resolvable:$true] %s371_s17 }
  0x2a   :  { %430 = vmatprep.subr.bf16.mxu0 %v579_v0  ;;  %442 = vmatprep.subr.bf16.mxu1 %v579_v0  ;;  %v495_v13 = vld [vmem:[%s753_s3 + $0x30] sm:$0xff]   ;;  %v496_v14 = vld [vmem:[%s753_s3 + $0x38] sm:$0xff]   ;;  %v497_v15 = vld [vmem:[%s755_s5] sm:$0xff]   ;;  %p554_p3 = scmp.lt.s32.totalorder %s372_s17, %s372_s17 }
  0x2b   :  { %v498_v16 = vld [vmem:[%s755_s5 + $0x8] sm:$0xff]   ;;  %v499_v17 = vld [vmem:[%s755_s5 + $0x10] sm:$0xff]   ;;  %v500_v18 = vld [vmem:[%s755_s5 + $0x18] sm:$0xff]  }
  0x2c   :  { %v501_v19 = vld [vmem:[%s755_s5 + $0x20] sm:$0xff]   ;;  %v502_v20 = vld [vmem:[%s755_s5 + $0x28] sm:$0xff]   ;;  %v503_v29 = vld [vmem:[%s755_s5 + $0x30] sm:$0xff]  }
  0x2d   :  { %431 = vmatpush3.bf16.msra.mxu0 %v486_v2  ;;  %443 = vmatpush3.bf16.msra.mxu1 %v490_v5  ;;  %v381_v21 = vld [vmem:[%s752_s2] ss:$0 sm:$0xff]  ;;  %v504_v30 = vld [vmem:[%s755_s5 + $0x38] sm:$0xff]   ;;  %v396_v39 = vld [vmem:[#allocation5] ss:$0 sm:$0xff] }
  0x2e   :  { %432 = vmatprep.subr.bf16.mxu0 %v579_v0  ;;  %444 = vmatprep.subr.bf16.mxu1 %v579_v0  ;;  %v387_v31 = vld [vmem:[%s754_s4] ss:$0 sm:$0xff]  ;;  %s549_s4 = scalar_lea.vmem %s372_s17, 128 }
  0x2f   :  { %p550_p2 = scmp.ne.s32.totalorder %s372_s17, %s549_s4  ;;  %p555_p4 = scmp.lt.s32.totalorder %s549_s4, %s549_s4 }
  0x31   :  { %433 = vmatpush3.bf16.msra.mxu0 %v487_v4  ;;  %445 = vmatpush3.bf16.msra.mxu1 %v491_v8  ;;  %p556_p5 = por %p555_p4, %p554_p3 }
  0x32   :  { %434 = vmatprep.subr.bf16.mxu0 %v579_v0  ;;  %446 = vmatprep.subr.bf16.mxu1 %v579_v0 }
  0x33   :  { %p557_p6 = pnand %p556_p5, %p550_p2 }
  0x35   :  { %435 = vmatpush3.bf16.msra.mxu0 %v488_v6  ;;  %447 = vmatpush3.bf16.msra.mxu1 %v492_v10 }
  0x36   :  { %460 = vmatprep.subr.bf16.mxu0 %v579_v0  ;;  %448 = vmatprep.subr.bf16.mxu1 %v579_v0 }
  0x38   :  { %437 = vmatmul.mubr.msk.bf16.vlgmr.msra.gmra.mrb[0].mxu0 %vm93_vm1, %v53_v9 }
  0x39   :  { %476 = vmatprep.mubr.msk.bf16.mxu0 %vm580_vm0, %v579_v0  ;;  %449 = vmatpush3.bf16.msra.mxu1 %v493_v11 }
  0x3a   :  { %450 = vmatprep.subr.bf16.mxu1 %v579_v0  ;;  %461 = vmatpush3.bf16.msra.mxu0 %v497_v15 }
  0x3b   :  { %462 = vmatprep.subr.bf16.mxu0 %v579_v0 }
  0x3d   :  { %451 = vmatpush3.bf16.msra.mxu1 %v494_v12 }
  0x3e   :  { %452 = vmatprep.subr.bf16.mxu1 %v579_v0  ;;  %463 = vmatpush3.bf16.msra.mxu0 %v498_v16 }
  0x3f   :  { %464 = vmatprep.subr.bf16.mxu0 %v579_v0 }
  0x41   :  { %453 = vmatpush3.bf16.msra.mxu1 %v495_v13 }
  0x42   :  { %454 = vmatprep.subr.bf16.mxu1 %v579_v0  ;;  %465 = vmatpush3.bf16.msra.mxu0 %v499_v17 }
  0x43   :  { %466 = vmatprep.subr.bf16.mxu0 %v579_v0 }
  0x45   :  { %455 = vmatpush3.bf16.msra.mxu1 %v496_v14 }
  0x46   :  { %467 = vmatpush3.bf16.msra.mxu0 %v500_v18 }
  0x47   :  { %468 = vmatprep.subr.bf16.mxu0 %v579_v0 }
  0x4a   :  { %469 = vmatpush3.bf16.msra.mxu0 %v501_v19 }
  0x4b   :  { %470 = vmatprep.subr.bf16.mxu0 %v579_v0 }
  0x4e   :  { %471 = vmatpush3.bf16.msra.mxu0 %v502_v20 }
  0x4f   :  { %472 = vmatprep.subr.bf16.mxu0 %v579_v0 }
  0x52   :  { %473 = vmatpush3.bf16.msra.mxu0 %v503_v29 }
  0x53   :  { %474 = vmatprep.subr.bf16.mxu0 %v579_v0 }
  0x56   :  { %475 = vmatpush3.bf16.msra.mxu0 %v504_v30 }
 0x10b   :  { %v131_v22 = vpop.f32.mrb[0].mxu0 }
 0x10c   :  { %v132_v23 = vadd.f32 %v381_v21, %v131_v22  ;;  %v438_v24 = vpop.f32.mrb[1].mxu0 }
 0x10d   :  { %v134_v25 = vpop.f32.mrb[2].mxu0 }
 0x10e   :  { %v137_v26 = vmax.f32 %v132_v23, 0.0  ;;  %v439_v27 = vpop.f32.mrb[3].mxu0 }
 0x110   :  { %v138_v28 = vpack.c.bf16 %v137_v26, %v137_v26 }
 0x112   :  { %457 = vmatmul.mubr.bf16.vlgmr.msra.gmra.mrb[0].mxu1 %v138_v28 }
 0x1e5   :  { %v244_v32 = vpop.f32.mrb[0].mxu1 }
 0x1e6   :  { %v245_v33 = vadd.f32 %v387_v31, %v244_v32  ;;  %v458_v34 = vpop.f32.mrb[1].mxu1 }
 0x1e7   :  { %v247_v35 = vpop.f32.mrb[2].mxu1 }
 0x1e8   :  { %v250_v36 = vmax.f32 %v245_v33, 0.0  ;;  %v459_v37 = vpop.f32.mrb[3].mxu1 }
 0x1ea   :  { %v251_v38 = vpack.c.bf16 %v250_v36, %v250_v36 }
 0x1ec   :  { %477 = vmatmul.mubr.bf16.vlgmr.msra.gmra.mrb[4].mxu0 %v251_v38 }
 0x2bf   :  { %v357_v40 = vpop.f32.mrb[4].mxu0 }
 0x2c0   :  { %v358_v41 = vadd.f32 %v396_v39, %v357_v40  ;;  %v478_v42 = vpop.f32.mrb[5].mxu0 }
 0x2c1   :  { %v360_v43 = vpop.f32.mrb[6].mxu0 }
 0x2c2   :  { %v479_v44 = vpop.f32.mrb[7].mxu0  ;;  %364 = vst.msk [vmem:[#allocation7] sm:$0xff] %vm363_vm2, %v358_v41 }
 0x2c3   :  { %560 = shalt.err (!%p557_p6)
}
 0x2c4   :  { %s561_s19 = scalar_lea.hbm %s757_s7, 128 }
 0x2c5   :  { %p562_p7 = scmp.ne.s32.totalorder %s757_s7, %s561_s19  ;;  %p565_p8 = scmp.lt.u32.totalorder %s561_s19, %s757_s7 }
 0x2c7   :  { %p567_p9 = pnand %p565_p8, %p562_p7 }
 0x2c9   :  { %570 = shalt.err (!%p567_p9)
}
 0x2ca   :  { %374 = dma.vmem_to_hbm [thread:$0]  %s372_s17, 128, %s757_s7, [#allocation4]  }
 0x2cb   :  { %575 = dma.done.wait [#allocation4], 128  }
 0x2cc   :  { %576 = vsyncadd [#allocation4], 4294967168 }
 0x2cd   :  { %378 = vsyncpa [#allocation3], 1 }
 0x2ce   :  { %379 = vsyncpa [#allocation6], 1 }
 0x2cf   :  { %380 = vsyncpa [#allocation4], 1 }

</bundles_post_ra>
